<compile_context>
chip_gen: v6e
topology: v6e:2x2x1
jax: 0.10.0
libtpu: 0.0.40
codegen_flags: <defaults>
</compile_context>

<pallas_src>
import math
import functools

import jax
import jax.numpy as jnp
from jax import lax
from jax.experimental import pallas as pl
from jax.experimental.pallas import tpu as pltpu


def make_positional_encoding(d_model: int, max_len: int = 5000, dtype=jnp.float32):
    """Deterministic sinusoidal table, identical math to the PyTorch __init__."""
    position = jnp.arange(max_len, dtype=jnp.float32)[:, None]                        # (L, 1)
    div_term = jnp.exp(
        jnp.arange(0, d_model, 2, dtype=jnp.float32) * (-math.log(10000.0) / d_model)
    )                                                                                  # (D/2,)
    pe = jnp.zeros((max_len, d_model), dtype=jnp.float32)
    pe = pe.at[:, 0::2].set(jnp.sin(position * div_term))
    pe = pe.at[:, 1::2].set(jnp.cos(position * div_term))
    return pe.astype(dtype)


def _hash_u32(v):
    """lowbias32 integer mixer: uint32 counter -> uniform uint32 bits (VPU-only ops)."""
    v = v ^ (v >> 16)
    v = v * jnp.uint32(0x7FEB352D)
    v = v ^ (v >> 15)
    v = v * jnp.uint32(0x846CA68B)
    v = v ^ (v >> 16)
    return v


def _pe_dropout_kernel(seed_ref, x_ref, pe_ref, o_ref, *,
                       p: float, training: bool, rng_impl: str,
                       block_rows: int, batch_group: int, d_model: int, total_cols: int):
    # x_ref / o_ref: (tS, bb*D) lane/sublane-dense VMEM tiles; pe_ref: (tS, D).
    x = x_ref[...]                                      # native dtype (no f32 upcast)
    pe_row = pe_ref[...]
    if batch_group == 1:
        pe = pe_row
    else:
        # Replicate pe across the batch along lanes (D is lane-aligned); VMEM-side
        # copies only, avoids a B x larger pe table / B x pe HBM traffic.
        pe = jnp.concatenate([pe_row] * batch_group, axis=1)
    y = x + pe

    if training and p > 0.0:
        # TODO(synk): dropout mask will not reproduce torch.nn.Dropout's RNG stream.
        shape = y.shape
        thresh = jnp.uint32(min(int(round(p * 4294967296.0)), 4294967295))
        if rng_impl == "hw":
            # Hardware PRNG: one draw + one unsigned compare per element (cheap on VALU).
            pltpu.prng_seed(seed_ref[0], pl.program_id(0), pl.program_id(1))
            bits = pltpu.prng_random_bits(shape)
            if bits.dtype != jnp.uint32:
                bits = pltpu.bitcast(bits, jnp.uint32)
        else:
            # Portable counter-hash fallback (pure integer VALU ops).
            # TODO(synk): uint32 counter assumes S*B*D < 2**32 elements.
            row0 = pl.program_id(0) * block_rows
            col0 = pl.program_id(1) * (batch_group * d_model)
            r = (lax.broadcasted_iota(jnp.int32, shape, 0) + row0).astype(jnp.uint32)
            c = (lax.broadcasted_iota(jnp.int32, shape, 1) + col0).astype(jnp.uint32)
            salt = seed_ref[0].astype(jnp.uint32) * jnp.uint32(0x9E3779B9)
            lin = (r * jnp.uint32(total_cols) + c) ^ salt
            bits = _hash_u32(lin)
        keep = bits >= thresh                           # keep iff bits >= p * 2^32
        scale = jnp.asarray(1.0 / (1.0 - p), dtype=y.dtype)
        y = jnp.where(keep, y, jnp.zeros_like(y)) * scale

    o_ref[...] = y.astype(o_ref.dtype)


def _vmem_limit_bytes():
    """Explicit scoped-VMEM limit: ~3/4 of physical per-core VMEM, clamped to [32, 96] MiB
    (96 MiB on v5e/v6e's 128 MiB, 48 MiB on v7x's 64 MiB)."""
    try:
        cap = int(pltpu.get_tpu_info().vmem_capacity_bytes)
    except Exception:
        cap = 64 << 20
    return max(32 << 20, min(96 << 20, (cap * 3) // 4))


def _choose_tiling(S, B, D, itemsize, target_bytes=4 << 20):
    """Pick (row_block, batch_group): x tile ~ target_bytes, 8-row aligned, lane-dense,
    with >= 2 row tiles whenever S allows it (so v7x can split across its two TCs)."""
    bb = B
    # Split the batch only if even an 8-row, full-width tile blows the budget.
    if 8 * B * D * itemsize > target_bytes and D % 128 == 0 and B > 1:
        bb = max(1, int(target_bytes // (8 * D * itemsize)))
        while bb > 1 and B % bb != 0:
            bb -= 1
        bb = max(1, bb)
    bd = bb * D
    if S < 8:
        return S, bb
    rows = max(8, int(target_bytes // max(1, bd * itemsize)))
    half = ((S + 1) // 2 + 7) // 8 * 8          # >= ceil(S/2), 8-aligned
    rows = min(rows, max(half, 8), S)
    rows = max(8, rows - rows % 8)
    return rows, bb


def positional_encoding_forward(x, pe, *, p: float = 0.1, training: bool = False,
                                seed: int = 0, row_block: int | None = None,
                                rng_impl: str = "hw"):
    """x: (S, B, D), pe: (max_len, D).  Returns dropout(x + pe[:S, None, :], p)."""
    S, B, D = x.shape
    max_len = pe.shape[0]
    assert S <= max_len, "sequence longer than positional-encoding table"
    pe = pe.astype(x.dtype)                     # compute in the activation dtype
    itemsize = x.dtype.itemsize

    rows, bb = _choose_tiling(S, B, D, itemsize)
    if row_block is not None:
        rows = min(int(row_block), S)
        if S >= 8:
            rows = max(8, rows - rows % 8)
    bd = bb * D
    grid = (pl.cdiv(S, rows), B // bb)

    x2 = x.reshape(S, B * D)                    # free, layout-only reshape
    seed_arr = jnp.asarray([seed], dtype=jnp.int32)
    kernel = functools.partial(
        _pe_dropout_kernel, p=float(p), training=bool(training), rng_impl=rng_impl,
        block_rows=rows, batch_group=bb, d_model=D, total_cols=B * D)

    out2 = pl.pallas_call(
        kernel,
        out_shape=jax.ShapeDtypeStruct((S, B * D), x.dtype),
        grid_spec=pltpu.PrefetchScalarGridSpec(
            num_scalar_prefetch=1,                                        # seed -> SMEM
            grid=grid,
            in_specs=[
                pl.BlockSpec((rows, bd), lambda i, j, s: (i, j)),         # x tile (dense)
                pl.BlockSpec((rows, D), lambda i, j, s: (i, 0)),          # pe rows for tile
            ],
            out_specs=pl.BlockSpec((rows, bd), lambda i, j, s: (i, j)),
        ),
        compiler_params=pltpu.CompilerParams(
            dimension_semantics=("parallel", "parallel"),
            vmem_limit_bytes=_vmem_limit_bytes(),
        ),
    )(seed_arr, x2, pe)
    return out2.reshape(S, B, D)


if __name__ == "__main__":
    # Small shapes: seq=64, batch=4, d_model=128 (lane-aligned), max_len=128.
    S, B, D, MAX_LEN = 64, 4, 128, 128
    key = jax.random.PRNGKey(0)
    x = jax.random.normal(key, (S, B, D), dtype=jnp.float32)
    pe = make_positional_encoding(D, max_len=MAX_LEN)

    ref = x + pe[:S][:, None, :]

    # Eval mode (dropout = identity): exact check against pure-JAX reference.
    out_eval = jax.block_until_ready(
        positional_encoding_forward(x, pe, p=0.1, training=False))
    assert out_eval.shape == (S, B, D) and out_eval.dtype == x.dtype
    assert jnp.allclose(out_eval, ref, atol=1e-6), "eval-mode mismatch"

    # Training mode (dropout active): surviving values equal ref/(1-p); dropped are exactly 0.
    p = 0.1
    try:
        out_train = jax.block_until_ready(
            positional_encoding_forward(x, pe, p=p, training=True, seed=1234,
                                        row_block=16, rng_impl="hw"))
    except Exception:
        # TODO(synk): hardware PRNG failed to lower on this backend; using the
        # portable integer-hash dropout fallback instead.
        out_train = jax.block_until_ready(
            positional_encoding_forward(x, pe, p=p, training=True, seed=1234,
                                        row_block=16, rng_impl="hash"))
    scaled_ref = ref * (1.0 / (1.0 - p))
    kept = out_train != 0
    assert jnp.allclose(jnp.where(kept, out_train, scaled_ref), scaled_ref, atol=1e-5)
    keep_frac = float(jnp.mean(kept.astype(jnp.float32)))
    assert 0.85 < keep_frac < 0.95, f"dropout keep fraction off: {keep_frac}"

    print("KERNEL_OK")
</pallas_src>

<mosaic_0001>
module attributes {stable_mosaic.version = 11 : i64} {
  func.func @_pe_dropout_kernel(%arg0: i32, %arg1: i32, %arg2: memref<1xi32, #tpu.memory_space<smem>>, %arg3: memref<32x512xf32, #tpu.memory_space<vmem>>, %arg4: memref<32x128xf32, #tpu.memory_space<vmem>>, %arg5: memref<32x512xf32, #tpu.memory_space<vmem>>) attributes {dimension_semantics = [#tpu.dimension_semantics<parallel>, #tpu.dimension_semantics<parallel>], iteration_bounds = array<i64: 2, 1>, scalar_prefetch = 1 : i64, scratch_operands = 0 : i64, tpu.core_type = #tpu.core_type<tc>, window_params = [{transform_indices = @transform_0, window_bounds = array<i64: 32, 512>}, {transform_indices = @transform_1, window_bounds = array<i64: 32, 128>}, {transform_indices = @transform_2, window_bounds = array<i64: 32, 512>}]} {
    %c0 = arith.constant 0 : index
    %c0_0 = arith.constant 0 : index
    %0 = vector.load %arg3[%c0, %c0_0] : memref<32x512xf32, #tpu.memory_space<vmem>>, vector<32x512xf32>
    %c0_1 = arith.constant 0 : index
    %c0_2 = arith.constant 0 : index
    %1 = vector.load %arg4[%c0_1, %c0_2] : memref<32x128xf32, #tpu.memory_space<vmem>>, vector<32x128xf32>
    %2 = tpu.concatenate %1, %1, %1, %1 in 1 : vector<32x128xf32>, vector<32x128xf32>, vector<32x128xf32>, vector<32x128xf32> -> vector<32x512xf32>
    %3 = arith.addf %0, %2 : vector<32x512xf32>
    %c0_3 = arith.constant 0 : index
    %c0_4 = arith.constant 0 : index
    %4 = vector.load %arg5[%c0_3, %c0_4] : memref<32x512xf32, #tpu.memory_space<vmem>>, vector<32x512xf32>
    tpu.vector_store %arg5[%c0_3, %c0_4], %3 {strides = array<i32>} : memref<32x512xf32, #tpu.memory_space<vmem>>, vector<32x512xf32>,
    return
  }
  func.func @transform_0(%arg0: i32, %arg1: i32, %arg2: memref<1xi32, #tpu.memory_space<smem>>) -> (i32, i32) {
    %c0_i32 = arith.constant 0 : i32
    return %arg0, %arg1 : i32, i32
  }
  func.func @transform_1(%arg0: i32, %arg1: i32, %arg2: memref<1xi32, #tpu.memory_space<smem>>) -> (i32, i32) {
    %c0_i32 = arith.constant 0 : i32
    %c0_i32_0 = arith.constant 0 : i32
    return %arg0, %c0_i32 : i32, i32
  }
  func.func @transform_2(%arg0: i32, %arg1: i32, %arg2: memref<1xi32, #tpu.memory_space<smem>>) -> (i32, i32) {
    %c0_i32 = arith.constant 0 : i32
    return %arg0, %arg1 : i32, i32
  }
}

</mosaic_0001>

<bundles_post_ra>
// kernel: tpu_custom_call.1
= control target key start
LH: loop header
LB: loop body
LE: loop exit
PB: predicated region body
PF: predicated region fallthrough
CT: control target
= control target key end

     0   :  { %9 = vsyncpa [#allocation5], 0  ;;  %s896_s0 = inlined_call_operand.<no memory space> [shape: s32[1], index: 0, kind: input, shape index: {}]   ;;  %s897_s1 = inlined_call_operand.hbm [shape: f32[64,512], index: 1, kind: input, shape index: {}]   ;;  %s898_s2 = inlined_call_operand.hbm [shape: f32[128,128], index: 2, kind: input, shape index: {}]   ;;  %s899_s3 = inlined_call_operand.hbm [shape: f32[64,512], index: 3, kind: output, shape index: {}]  }
   0x1   :  { %11 = vsyncpa [#allocation5 + $0x1], 0 }
   0x2   :  { %12 = vsyncpa [#allocation8], 0 }
   0x3   :  { %14 = vsyncpa [#allocation8 + $0x1], 0 }
   0x4   :  { %15 = vsyncpa [#allocation6], 0 }
   0x5   :  { %17 = vsyncpa [#allocation6 + $0x1], 0  ;;  %s677_s12 = smov 0   ;;  %s679_s13 = smov 0  }
   0x6   :  { %s681_s0 = smov 0   ;;  %s683_s14 = smov 0  }
   0x7   :  { %s685_s15 = smov 0   ;;  %s687_s16 = smov 0  }
   0x8 LB: > { %s407_s17 = sadd.s32 4294967295, %s646_s16   ;;  %s408_s18 = sadd.s32 4294967294, %s646_s16   ;;  %s646_s16 = sphi %s687_s16, %s23_s16   ;;  %s642_s15 = sphi %s685_s15, %s910_s15   ;;  %s638_s14 = sphi %s683_s14, %s909_s14   ;;  %s634_s0 = sphi %s681_s0, %s908_s0   ;;  %s630_s13 = sphi %s679_s13, %s907_s13   ;;  %s626_s12 = sphi %s677_s12, %s906_s12  }
   0x9   : > { %s35_s19 = sadd.s32 1, %s642_s15  ;;  %s44_s20 = sadd.s32 1, %s634_s0 }
   0xa   : > { %p37_p0 = scmp.ge.s32.totalorder %s35_s19, 2  ;;  %p51_p1 = scmp.ne.s32.totalorder %s634_s0, %s630_s13 }
   0xb   : > { %p52_p2 = scmp.eq.s32.totalorder %s646_s16, 0  ;;  %p57_p3 = scmp.ne.s32.totalorder %s630_s13, %s626_s12 }
   0xc   : > { %s912_s19 = smov (%p37_p0, %s35_s19), 0  ;;  %p58_p5 = scmp.eq.s32.totalorder %s407_s17, 0 }
   0xd   : > { %p718_p4 = por %p52_p2, %p51_p1  ;;  %s39_s22 = ssub.s32 %s642_s15, %s912_s19 }
   0xe   : > { %p109_p6 = scmp.eq.s32.totalorder %s407_s17, 1  ;;  %p42_p7 = scmp.eq.s32.totalorder %s39_s22, 0 }
   0xf   : > { %p724_p8 = por %p58_p5, %p57_p3  ;;  %p115_p10 = scmp.eq.s32.totalorder %s408_s18, 1 }
  0x10   : > { %p728_p9 = por %p109_p6, %p51_p1  ;;  %p410_p12 = scmp.ge.s32.totalorder %s646_s16, 2 }
  0x11   : > { %s733_s25 = scalar_select %p42_p7, %s634_s0, %s44_s20  }
  0x12   : > { %p735_p11 = por %p115_p10, %p57_p3  ;;  %p450_p13 = scmp.lt.s32.totalorder %s646_s16, 2 }
  0x13   : > { %s742_s27 = sand.u32 1, %s634_s0   ;;  %s429_s29 = sshll.u32 %s642_s15, 11 }
  0x14   : > { %s411_s28 = sshll.u32 %s742_s27, 7  ;;  %s148_s5 = scalar_lea.hbm %s897_s1, %s429_s29 }
  0x15   : > { %s139_s6 = scalar_lea.vmem [#allocation4], %s411_s28  ;;  %p751_p0 = pnand %p450_p13, %p718_p4 }
  0x16   : > { %s149_s7 = sshll.u32 %s139_s6, 4  ;;  %p418_p1 = scmp.ge.s32.totalorder %s646_s16, 1  ;;  %s150_s7 = int_to_ptr.vmem [resolvable:$true] %s149_s7 }
  0x17   : > { %s136_s9 = scalar_lea.sflag [#allocation5], %s742_s27  ;;  %p508_p2 = pneg %p751_p0 }
  0x18   : > { %s519_s10 = scalar_lea.vmem %s150_s7, 2048  ;;  %s648_s11 = smov [#allocation4]  }
  0x19   : > { %p520_p3 = scmp.ne.s32.totalorder %s150_s7, %s519_s10  ;;  %s524_s17 = sshll.u32 %s648_s11, 4  ;;  %s525_s17 = int_to_ptr.vmem [resolvable:$false] %s524_s17 }
  0x1a   : > { %s526_s18 = scalar_lea.vmem %s525_s17, 4096  ;;  %p527_p4 = scmp.lt.s32.totalorder %s150_s7, %s525_s17 }
  0x1b   : > { %p522_p5 = pnand %p520_p3, %p508_p2  ;;  %p528_p7 = scmp.lt.s32.totalorder %s526_s18, %s519_s10 }
  0x1d   : > { %p523_p6 = pneg %p522_p5  ;;  %p529_p10 = por %p528_p7, %p527_p4 }
  0x1f   : > { %p530_p13 = pnand %p529_p10, %p523_p6 }
  0x21   : > { %533 = shalt.err (!%p530_p13)
}
  0x22   : > { %s649_s20 = smov 512   ;;  %s650_s21 = smov 32  }
  0x23   : > { %442 = dma.hbm_to_vmem [thread:$0]  (!%p751_p0), %s148_s5, 2048, %s150_s7, %s136_s9, %s649_s20, %s649_s20, %s650_s21  }
  0x24   : > { %p178_p3 = scmp.lt.s32.totalorder %s646_s16, 3  ;;  %s415_s22 = sshll.u32 %s742_s27, 5 }
  0x25   : > { %s430_s28 = sshll.u32 %s642_s15, 9  ;;  %s163_s10 = scalar_lea.vmem [#allocation7], %s415_s22 }
  0x26   : > { %p769_p5 = pnand %p418_p1, %p178_p3  ;;  %s169_s6 = scalar_lea.hbm %s898_s2, %s430_s28 }
  0x27   : > { %s170_s11 = sshll.u32 %s163_s10, 4  ;;  %s160_s17 = scalar_lea.sflag [#allocation8], %s742_s27  ;;  %s171_s11 = int_to_ptr.vmem [resolvable:$true] %s170_s11 }
  0x28   : > { %s547_s18 = scalar_lea.vmem %s171_s11, 512  ;;  %s651_s5 = smov [#allocation7]  }
  0x29   : > { %p548_p6 = scmp.ne.s32.totalorder %s171_s11, %s547_s18  ;;  %s552_s7 = sshll.u32 %s651_s5, 4  ;;  %s553_s7 = int_to_ptr.vmem [resolvable:$false] %s552_s7 }
  0x2a   : > { %s554_s9 = scalar_lea.vmem %s553_s7, 1024  ;;  %p555_p1 = scmp.lt.s32.totalorder %s171_s11, %s553_s7 }
  0x2b   : > { %p550_p4 = pnand %p548_p6, %p508_p2  ;;  %p556_p10 = scmp.lt.s32.totalorder %s554_s9, %s547_s18 }
  0x2d   : > { %p551_p7 = pneg %p550_p4  ;;  %p557_p13 = por %p556_p10, %p555_p1 }
  0x2f   : > { %p558_p3 = pnand %p557_p13, %p551_p7 }
  0x31   : > { %561 = shalt.err (!%p558_p3)
}
  0x32   : > { %s652_s20 = smov 128   ;;  %s653_s21 = smov 8  }
  0x33   : > { %445 = dma.hbm_to_vmem [thread:$0]  (!%p751_p0), %s169_s6, 512, %s171_s11, %s160_s17, %s652_s20, %s652_s20, %s653_s21  }
  0x34   : > { %182 = sbr.rel (%p769_p5) target bundleno = 86 (0x56), region = 28  ;;  %s785_s27 = sand.u32 (!%p769_p5), 1, %s630_s13  }
  0x35   : > { %s419_s22 = sshll.u32 (!%p769_p5), %s785_s27, 7  ;;  %s185_s28 = scalar_lea.sflag (!%p769_p5), [#allocation5], %s785_s27 }
  0x36   : > { %s789_s30 = scalar_lea.vmem (!%p769_p5), [#allocation4], %s419_s22 }
  0x39   : > { %613 = dma.done.wait (%p724_p8), %s185_s28, 2048  }
  0x3a   : > { %615 = vsyncadd (%p724_p8), %s185_s28, 4294965248  ;;  %s420_s8 = sshll.u32 %s785_s27, 5  ;;  %s194_s29 = scalar_lea.sflag [#allocation8], %s785_s27 }
  0x3b   : > { %s797_s4 = scalar_lea.vmem [#allocation7], %s420_s8 }
  0x3c   : > { %617 = dma.done.wait (%p724_p8), %s194_s29, 512  }
  0x3d   : > { %619 = vsyncadd (%p724_p8), %s194_s29, 4294966784  ;;  %v228_v0 = vld [vmem:[%s789_s30] sm:$0xff]  ;;  %v229_v2 = vld [vmem:[%s789_s30 + $0x8] sm:$0xff]  ;;  %s812_s23 = scalar_lea.vmem [#allocation9], %s419_s22  ;;  %s432_s6 = sshll.u32 %s638_s14, 11 }
  0x3e   : > { %v244_v1 = vld [vmem:[%s797_s4] sm:$0xff]  ;;  %v230_v5 = vld [vmem:[%s789_s30 + $0x10] sm:$0xff]  ;;  %v231_v6 = vld [vmem:[%s789_s30 + $0x18] sm:$0xff]  ;;  %s297_s10 = sshll.u32 %s812_s23, 4  ;;  %s839_s17 = scalar_lea.hbm %s899_s3, %s432_s6  ;;  %s841_s10 = int_to_ptr.vmem [resolvable:$true] %s297_s10 }
  0x3f   : > { %v248_v3 = vadd.f32 %v244_v1, %v228_v0  ;;  %v249_v4 = vadd.f32 %v244_v1, %v229_v2  ;;  %v232_v7 = vld [vmem:[%s789_s30 + $0x20] sm:$0xff]  ;;  %v250_v8 = vadd.f32 %v244_v1, %v230_v5  ;;  %v251_v9 = vadd.f32 %v244_v1, %v231_v6  ;;  %v245_v10 = vld [vmem:[%s797_s4 + $0x8] sm:$0xff]  ;;  %v234_v12 = vld [vmem:[%s789_s30 + $0x30] sm:$0xff]  ;;  %s281_s18 = scalar_lea.sflag [#allocation6], %s785_s27  ;;  %s562_s5 = scalar_lea.vmem %s841_s10, 2048 }
  0x40   : > { %v233_v11 = vld [vmem:[%s789_s30 + $0x28] sm:$0xff]  ;;  %v252_v13 = vadd.f32 %v245_v10, %v232_v7  ;;  %v254_v15 = vadd.f32 %v245_v10, %v234_v12  ;;  %v235_v16 = vld [vmem:[%s789_s30 + $0x38] sm:$0xff]  ;;  %v236_v17 = vld [vmem:[%s789_s30 + $0x40] sm:$0xff]  ;;  %p563_p8 = scmp.ne.s32.totalorder %s841_s10, %s562_s5  ;;  %s654_s7 = smov [#allocation9]  }
  0x41   : > { %264 = vst [vmem:[%s812_s23] sm:$0xff] %v248_v3  ;;  %265 = vst [vmem:[%s812_s23 + $0x8] sm:$0xff] %v249_v4  ;;  %v253_v14 = vadd.f32 %v245_v10, %v233_v11  ;;  %v246_v18 = vld [vmem:[%s797_s4 + $0x10] sm:$0xff]  ;;  %v255_v19 = vadd.f32 %v245_v10, %v235_v16  ;;  %v237_v21 = vld [vmem:[%s789_s30 + $0x48] sm:$0xff]  ;;  %s566_s9 = sshll.u32 %s654_s7, 4  ;;  %s567_s9 = int_to_ptr.vmem [resolvable:$false] %s566_s9 }
  0x42   : > { %266 = vst [vmem:[%s812_s23 + $0x10] sm:$0xff] %v250_v8  ;;  %267 = vst [vmem:[%s812_s23 + $0x18] sm:$0xff] %v251_v9  ;;  %v256_v20 = vadd.f32 %v246_v18, %v236_v17  ;;  %v238_v22 = vld [vmem:[%s789_s30 + $0x50] sm:$0xff]  ;;  %v239_v23 = vld [vmem:[%s789_s30 + $0x58] sm:$0xff]  ;;  %v257_v24 = vadd.f32 %v246_v18, %v237_v21  ;;  %p564_p0 = pnand %p563_p8, %p728_p9  ;;  %s568_s20 = scalar_lea.vmem %s567_s9, 4096 }
  0x43   : > { %268 = vst [vmem:[%s812_s23 + $0x20] sm:$0xff] %v252_v13  ;;  %269 = vst [vmem:[%s812_s23 + $0x28] sm:$0xff] %v253_v14  ;;  %v258_v25 = vadd.f32 %v246_v18, %v238_v22  ;;  %v259_v26 = vadd.f32 %v246_v18, %v239_v23  ;;  %v240_v27 = vld [vmem:[%s789_s30 + $0x60] sm:$0xff]  ;;  %v247_v28 = vld [vmem:[%s797_s4 + $0x18] sm:$0xff]  ;;  %p569_p5 = scmp.lt.s32.totalorder %s841_s10, %s567_s9  ;;  %p570_p6 = scmp.lt.s32.totalorder %s568_s20, %s562_s5 }
  0x44   : > { %270 = vst [vmem:[%s812_s23 + $0x30] sm:$0xff] %v254_v15  ;;  %v241_v29 = vld [vmem:[%s789_s30 + $0x68] sm:$0xff]  ;;  %271 = vst [vmem:[%s812_s23 + $0x38] sm:$0xff] %v255_v19  ;;  %v260_v30 = vadd.f32 %v247_v28, %v240_v27  ;;  %v242_v32 = vld [vmem:[%s789_s30 + $0x70] sm:$0xff]  ;;  %p565_p2 = pneg %p564_p0 }
  0x45   : > { %272 = vst [vmem:[%s812_s23 + $0x40] sm:$0xff] %v256_v20  ;;  %v261_v31 = vadd.f32 %v247_v28, %v241_v29  ;;  %v243_v33 = vld [vmem:[%s789_s30 + $0x78] sm:$0xff]  ;;  %273 = vst [vmem:[%s812_s23 + $0x48] sm:$0xff] %v257_v24  ;;  %v262_v34 = vadd.f32 %v247_v28, %v242_v32  ;;  %p571_p4 = por %p570_p6, %p569_p5 }
  0x46   : > { %274 = vst [vmem:[%s812_s23 + $0x50] sm:$0xff] %v258_v25  ;;  %275 = vst [vmem:[%s812_s23 + $0x58] sm:$0xff] %v259_v26  ;;  %v263_v35 = vadd.f32 %v247_v28, %v243_v33 }
  0x47   : > { %276 = vst [vmem:[%s812_s23 + $0x60] sm:$0xff] %v260_v30  ;;  %277 = vst [vmem:[%s812_s23 + $0x68] sm:$0xff] %v261_v31  ;;  %p572_p7 = pnand %p571_p4, %p565_p2 }
  0x48   : > { %278 = vst [vmem:[%s812_s23 + $0x70] sm:$0xff] %v262_v34  ;;  %279 = vst [vmem:[%s812_s23 + $0x78] sm:$0xff] %v263_v35 }
  0x49   : > { %575 = shalt.err (!%p572_p7)
}
  0x4a   : > { %s576_s21 = scalar_lea.hbm %s839_s17, 2048  ;;  %s580_s30 = scalar_lea.hbm %s899_s3, 4096 }
  0x4b   : > { %p577_p1 = scmp.ne.s32.totalorder %s839_s17, %s576_s21  ;;  %p581_p3 = scmp.lt.s32.totalorder %s839_s17, %s899_s3 }
  0x4c   : > { %p582_p8 = scmp.lt.s32.totalorder %s580_s30, %s576_s21 }
  0x4d   : > { %p578_p10 = pnand %p577_p1, %p728_p9 }
  0x4e   : > { %p583_p0 = por %p582_p8, %p581_p3 }
  0x4f   : > { %p579_p13 = pneg %p578_p10 }
  0x51   : > { %p584_p2 = pnand %p583_p0, %p579_p13 }
  0x53   : > { %587 = shalt.err (!%p584_p2)
}
  0x54   : > { %s655_s4 = smov 512   ;;  %s656_s23 = smov 32  }
  0x55   : > { %437 = dma.vmem_to_hbm [thread:$0]  (%p728_p9), %s841_s10, 2048, %s839_s17, %s281_s18, %s655_s4, %s655_s4, %s656_s23  }
  0x56 PF: > { %s312_s6 = sand.u32 1, %s626_s12   ;;  %p447_p5 = pnand %p410_p12, %p735_p11 }
  0x57   : > { %s313_s14 = scalar_lea.sflag [#allocation6], %s312_s6 }
  0x58   : > { %p448_p6 = pneg %p447_p5 }
  0x5a   : > { %621 = dma.done.wait (%p448_p6), %s313_s14, 2048  }
  0x5b   : > { %623 = vsyncadd (%p448_p6), %s313_s14, 4294965248  ;;  %s23_s16 = sadd.s32 1, %s646_s16   ;;  %s906_s12 = smov %s630_s13 }
  0x5c   : > { %p20_p4 = scmp.ge.s32.totalorder %s23_s16, 4   ;;  %s907_s13 = smov %s634_s0 }
  0x5d   : > { %s908_s0 = smov %s733_s25  ;;  %s909_s14 = smov %s642_s15 }
  0x5e   : > { %s910_s15 = smov %s912_s19  ;;  %22 = sbr.rel (!%p20_p4) target bundleno = 8 (0x8), region = 86 }
  0x63   :  { %318 = vsyncpa [#allocation5], 1 }
  0x64   :  { %320 = vsyncpa [#allocation5 + $0x1], 1 }
  0x65   :  { %321 = vsyncpa [#allocation8], 1 }
  0x66   :  { %323 = vsyncpa [#allocation8 + $0x1], 1 }
  0x67   :  { %324 = vsyncpa [#allocation6], 1 }
  0x68   :  { %326 = vsyncpa [#allocation6 + $0x1], 1 }

</bundles_post_ra>
